<compile_context>
chip_gen: v7x
topology: tpu7x:2x2x1
jax: 0.10.0
libtpu: 0.0.40
codegen_flags: <defaults>
</compile_context>

<pallas_src>
import collections
import functools

import numpy as np
import jax
import jax.numpy as jnp
from jax import lax
from jax.experimental import pallas as pl
from jax.experimental.pallas import tpu as pltpu


def _round_up(x, m):
    return ((x + m - 1) // m) * m


_LayerGeom = collections.namedtuple("_LayerGeom", ["k", "wpad", "lc", "mk"])


def _shift_left_lanes(arr, d):
    """arr'[..., f] = arr[..., f + d]; zeros fill the tail.

    The shifted-in zeros can only land at flat positions that are never
    selected by the downstream pooling / selection matmuls (proved by the
    geometry asserts in cnn_forward), so they never affect the result.
    """
    if d == 0:
        return arr
    pad = jnp.zeros(arr.shape[:-1] + (d,), arr.dtype)
    return jnp.concatenate([arr[..., d:], pad], axis=-1)


def _fused_cnn_kernel(*refs, geoms):
    """Whole-network forward for one batch sample (one grid step).

    refs layout (nL = number of conv layers):
      refs[0]                      x_ref     (1, C0, H*W)  flat raw input
      refs[1+3l : 4+3l]            s_pre_l (prev_len, hpad*wpad),
                                   w_l     (C_out, k*k*C_in),
                                   b_l     (C_out, 1)
      refs[1+3*nL]                 s_out     (lc_last, out_lanes)
      refs[2+3*nL]                 out_ref   (1, C_last, out_lanes)
      refs[3+3*nL:]                a_scratch_l (C_in_l, hpad_l*wpad_l)  VMEM
    """
    n_layers = len(geoms)
    x_ref = refs[0]
    layer_refs = refs[1:1 + 3 * n_layers]
    s_out_ref = refs[1 + 3 * n_layers]
    out_ref = refs[2 + 3 * n_layers]
    a_refs = refs[3 + 3 * n_layers:]

    act = x_ref[0]                                       # (C_in0, H*W)
    for l, g in enumerate(geoms):
        s_ref, w_ref, b_ref = layer_refs[3 * l: 3 * l + 3]
        a_ref = a_refs[l]

        # Re-phase the previous activation into this layer's zero-padded flat
        # image (row pitch = wpad) with one selection matmul; the padding ring
        # comes out as exact zeros (those columns of s_pre are all-zero).
        a_ref[...] = jnp.dot(act, s_ref[...],
                             preferred_element_type=jnp.float32)

        # im2col: the k*k taps stacked along the MXU contraction dimension.
        taps = []
        for di in range(g.k):
            for dj in range(g.k):
                off = di * g.wpad + dj                   # static lane offset
                taps.append(a_ref[:, pl.ds(off, g.lc)])
        rhs = jnp.concatenate(taps, axis=0)              # (k*k*C_in, lc)

        # Conv (one deep MXU dot) + bias + ReLU.  y[:, h*wpad + w] = conv[h,w].
        y = jnp.dot(w_ref[...], rhs, preferred_element_type=jnp.float32)
        y = jnp.maximum(y + b_ref[...], 0.0)

        # mk x mk max-pool via static lane shifts + elementwise max.  The
        # pooled value of window (hp, wp) lands at flat index
        # mk*hp*wpad + mk*wp of mcol (floor-mode: trailing rows/cols dropped).
        mrow = y
        for v in range(1, g.mk):
            mrow = jnp.maximum(mrow, _shift_left_lanes(y, v))
        mcol = mrow
        for u in range(1, g.mk):
            mcol = jnp.maximum(mcol, _shift_left_lanes(mrow, u * g.wpad))
        act = mcol                                       # (C_out, lc)

    # Gather the final pooled grid into a lane-dense row-major (hp, wp) slab
    # (out_lanes is a multiple of 128 -> unmasked vector stores).
    out_ref[0] = jnp.dot(act, s_out_ref[...],
                         preferred_element_type=jnp.float32)


def cnn_forward(params, x, *, maxpool_kernels, padding):
    """Matches CNN.forward: per layer conv(stride 1) -> ReLU -> maxpool, then
    .view(N, -1).  The whole network runs inside one pallas_call."""
    N, C0, H, W = x.shape
    n_layers = len(params)
    assert len(maxpool_kernels) == n_layers and len(padding) == n_layers

    operands = [x.reshape(N, C0, H * W).astype(jnp.float32)]  # free reshape
    in_specs = [pl.BlockSpec((1, C0, H * W), lambda n: (n, 0, 0))]
    scratch_shapes = []
    geoms = []
    flops = 0

    # Pixel (i, j) of the current layer's input lives at flat index
    # i*prev_rs + j*prev_cs of the previous representation (length prev_len).
    prev_rs, prev_cs, prev_len = W, 1, H * W
    hin, win, c_last = H, W, C0
    for l, (w, b) in enumerate(params):
        C_out, C_in, k, k2 = w.shape
        assert k == k2, "square kernels only"
        assert C_in == c_last
        pad, mk = padding[l], maxpool_kernels[l]
        hpad, wpad = hin + 2 * pad, win + 2 * pad
        ho, wo = hpad - k + 1, wpad - k + 1            # stride-1 conv
        assert ho >= mk and wo >= mk, "pool window larger than conv output"
        hp, wp = ho // mk, wo // mk                    # floor-mode pooling
        lc = (ho - 1) * wpad + wo                      # flat conv-output length
        a_lanes = hpad * wpad
        # Static tap-slice bound (VMEM OOB is unchecked at runtime).
        assert (k - 1) * wpad + (k - 1) + lc <= a_lanes
        # Shift-in-zeros safety for the pooling shifts (see _shift_left_lanes).
        assert mk * (hp - 1) * wpad + mk * (wp - 1) + (mk - 1) * (wpad + 1) < lc

        # Selection matrix: previous representation -> zero-padded flat image.
        s_pre = np.zeros((prev_len, a_lanes), np.float32)
        for i in range(hin):
            for j in range(win):
                s_pre[i * prev_rs + j * prev_cs, (i + pad) * wpad + (j + pad)] = 1.0

        # Weight rows must match the rhs row order t*C_in + c, t = di*k + dj.
        w_flat = jnp.transpose(w, (0, 2, 3, 1)).reshape(C_out, k * k * C_in)
        operands += [jnp.asarray(s_pre),
                     w_flat.astype(jnp.float32),
                     b.reshape(C_out, 1).astype(jnp.float32)]
        in_specs += [
            pl.BlockSpec((prev_len, a_lanes), lambda n: (0, 0)),
            pl.BlockSpec((C_out, k * k * C_in), lambda n: (0, 0)),
            pl.BlockSpec((C_out, 1), lambda n: (0, 0)),
        ]
        scratch_shapes.append(pltpu.VMEM((C_in, a_lanes), jnp.float32))
        geoms.append(_LayerGeom(k=k, wpad=wpad, lc=lc, mk=mk))

        flops += 2 * C_in * prev_len * a_lanes         # re-phase matmul
        flops += 2 * C_out * (k * k * C_in) * lc       # conv matmul

        prev_rs, prev_cs, prev_len = mk * wpad, mk, lc
        hin, win, c_last = hp, wp, C_out

    # Final gather: pooled grid -> lane-dense row-major slab (>=128 lanes).
    out_valid = hin * win
    out_lanes = _round_up(max(out_valid, 1), 128)
    s_out = np.zeros((prev_len, out_lanes), np.float32)
    for i in range(hin):
        for j in range(win):
            s_out[i * prev_rs + j * prev_cs, i * win + j] = 1.0
    operands.append(jnp.asarray(s_out))
    in_specs.append(pl.BlockSpec((prev_len, out_lanes), lambda n: (0, 0)))
    flops += 2 * c_last * prev_len * out_lanes
    flops *= N

    bytes_accessed = sum(int(np.prod(o.shape)) * 4 for o in operands)
    bytes_accessed += N * c_last * out_lanes * 4

    kernel = functools.partial(_fused_cnn_kernel, geoms=tuple(geoms))
    out = pl.pallas_call(
        kernel,
        out_shape=jax.ShapeDtypeStruct((N, c_last, out_lanes), jnp.float32),
        grid=(N,),
        in_specs=in_specs,
        out_specs=pl.BlockSpec((1, c_last, out_lanes), lambda n: (n, 0, 0)),
        scratch_shapes=scratch_shapes,
        compiler_params=pltpu.CompilerParams(
            dimension_semantics=("parallel",)),
        cost_estimate=pl.CostEstimate(flops=int(flops), transcendentals=0,
                                      bytes_accessed=int(bytes_accessed)),
    )(*operands)

    # PyTorch's final .view(N, -1): drop the (finite, zero) lane padding and
    # flatten; both are cheap/free host-side ops on a tiny array.
    return out[:, :, :out_valid].reshape(N, c_last * out_valid)


# ----------------------------------------------------------------------------
# Parameters and pure-JAX reference
# ----------------------------------------------------------------------------
def init_cnn_params(key, layers, kernels):
    """Deterministic Conv2d-style parameter init (OIHW weights, biases)."""
    params = []
    for idx, (cin, cout) in enumerate(zip(layers, layers[1:])):
        k = kernels[idx]
        key, wk, bk = jax.random.split(key, 3)
        bound = 1.0 / float(np.sqrt(cin * k * k))
        w = jax.random.uniform(wk, (cout, cin, k, k), jnp.float32, -bound, bound)
        b = jax.random.uniform(bk, (cout,), jnp.float32, -bound, bound)
        params.append((w, b))
    return params


def cnn_forward_ref(params, x, *, maxpool_kernels, padding):
    act = x
    for l, (w, b) in enumerate(params):
        p = padding[l]
        y = lax.conv_general_dilated(
            act, w, window_strides=(1, 1), padding=((p, p), (p, p)),
            dimension_numbers=("NCHW", "OIHW", "NCHW"))
        y = jnp.maximum(y + b[None, :, None, None], 0.0)
        k = maxpool_kernels[l]
        act = lax.reduce_window(y, -jnp.inf, lax.max,
                                (1, 1, k, k), (1, 1, k, k), "VALID")
    return act.reshape(act.shape[0], -1)


if __name__ == "__main__":
    key = jax.random.PRNGKey(0)

    configs = [
        # (Layers, Kernels, MaxPoolKernels, Padding, input shape)
        ([4, 8, 16], [3, 3], [2, 2], [1, 1], (2, 4, 16, 16)),
        # Exercises floor-mode pooling where mk does not divide the conv
        # output (7 -> 3) and a single-layer network.
        ([3, 6], [3], [2], [0], (2, 3, 9, 9)),
    ]

    for layers, kernels, mks, pads, xshape in configs:
        key, pk, xk = jax.random.split(key, 3)
        params = init_cnn_params(pk, layers, kernels)
        x = jax.random.normal(xk, xshape, jnp.float32)

        fwd = jax.jit(functools.partial(cnn_forward,
                                        maxpool_kernels=tuple(mks),
                                        padding=tuple(pads)))
        out = jax.block_until_ready(fwd(params, x))
        ref = cnn_forward_ref(params, x, maxpool_kernels=tuple(mks),
                              padding=tuple(pads))
        assert out.shape == ref.shape, (out.shape, ref.shape)
        err = float(jnp.max(jnp.abs(out - ref)))
        assert jnp.allclose(out, ref, atol=2e-3, rtol=2e-3), \
            f"mismatch vs reference (max abs err {err})"

    print("KERNEL_OK")
</pallas_src>

<mosaic_0001>
module attributes {stable_mosaic.version = 11 : i64} {
  func.func @_fused_cnn_kernel(%arg0: i32, %arg1: memref<1x4x256xf32, #tpu.memory_space<vmem>>, %arg2: memref<256x324xf32, #tpu.memory_space<vmem>>, %arg3: memref<8x36xf32, #tpu.memory_space<vmem>>, %arg4: memref<8x1xf32, #tpu.memory_space<vmem>>, %arg5: memref<286x100xf32, #tpu.memory_space<vmem>>, %arg6: memref<16x72xf32, #tpu.memory_space<vmem>>, %arg7: memref<16x1xf32, #tpu.memory_space<vmem>>, %arg8: memref<78x128xf32, #tpu.memory_space<vmem>>, %arg9: memref<1x16x128xf32, #tpu.memory_space<vmem>>, %arg10: memref<4x324xf32, #tpu.memory_space<vmem>>, %arg11: memref<8x100xf32, #tpu.memory_space<vmem>>) attributes {dimension_semantics = [#tpu.dimension_semantics<parallel>], iteration_bounds = array<i64: 2>, scalar_prefetch = 0 : i64, scratch_operands = 2 : i64, tpu.core_type = #tpu.core_type<tc>, window_params = [{transform_indices = @transform_0, window_bounds = array<i64: 1, 4, 256>}, {pipeline_mode = #tpu.pipeline_mode<synchronous>, transform_indices = @transform_1, window_bounds = array<i64: 256, 324>}, {pipeline_mode = #tpu.pipeline_mode<synchronous>, transform_indices = @transform_2, window_bounds = array<i64: 8, 36>}, {pipeline_mode = #tpu.pipeline_mode<synchronous>, transform_indices = @transform_3, window_bounds = array<i64: 8, 1>}, {pipeline_mode = #tpu.pipeline_mode<synchronous>, transform_indices = @transform_4, window_bounds = array<i64: 286, 100>}, {pipeline_mode = #tpu.pipeline_mode<synchronous>, transform_indices = @transform_5, window_bounds = array<i64: 16, 72>}, {pipeline_mode = #tpu.pipeline_mode<synchronous>, transform_indices = @transform_6, window_bounds = array<i64: 16, 1>}, {pipeline_mode = #tpu.pipeline_mode<synchronous>, transform_indices = @transform_7, window_bounds = array<i64: 78, 128>}, {transform_indices = @transform_8, window_bounds = array<i64: 1, 16, 128>}]} {
    %c0 = arith.constant 0 : index
    %c0_0 = arith.constant 0 : index
    %c0_1 = arith.constant 0 : index
    %0 = vector.load %arg1[%c0, %c0_0, %c0_1] : memref<1x4x256xf32, #tpu.memory_space<vmem>>, vector<1x4x256xf32>
    %1 = vector.shape_cast %0 : vector<1x4x256xf32> to vector<4x256xf32>
    %c0_2 = arith.constant 0 : index
    %c0_3 = arith.constant 0 : index
    %2 = vector.load %arg2[%c0_2, %c0_3] : memref<256x324xf32, #tpu.memory_space<vmem>>, vector<256x324xf32>
    %cst = arith.constant dense<0.000000e+00> : vector<4x324xf32>
    %3 = tpu.matmul %1, %2, %cst {dimension_numbers = #tpu.dot_dimension_numbers<[1], [0], [0], [1], [0, 0, 1, 1], [], []>} : vector<4x256xf32>, vector<256x324xf32>, vector<4x324xf32> -> vector<4x324xf32>
    %c0_4 = arith.constant 0 : index
    %c0_5 = arith.constant 0 : index
    %4 = vector.load %arg10[%c0_4, %c0_5] : memref<4x324xf32, #tpu.memory_space<vmem>>, vector<4x324xf32>
    tpu.vector_store %arg10[%c0_4, %c0_5], %3 {strides = array<i32>} : memref<4x324xf32, #tpu.memory_space<vmem>>, vector<4x324xf32>,
    %c0_6 = arith.constant 0 : index
    %c0_7 = arith.constant 0 : index
    %5 = vector.load %arg10[%c0_6, %c0_7] : memref<4x324xf32, #tpu.memory_space<vmem>>, vector<4x286xf32>
    %c0_8 = arith.constant 0 : index
    %c1 = arith.constant 1 : index
    %6 = vector.load %arg10[%c0_8, %c1] : memref<4x324xf32, #tpu.memory_space<vmem>>, vector<4x286xf32>
    %c0_9 = arith.constant 0 : index
    %c2 = arith.constant 2 : index
    %7 = vector.load %arg10[%c0_9, %c2] : memref<4x324xf32, #tpu.memory_space<vmem>>, vector<4x286xf32>
    %c0_10 = arith.constant 0 : index
    %c18 = arith.constant 18 : index
    %8 = vector.load %arg10[%c0_10, %c18] : memref<4x324xf32, #tpu.memory_space<vmem>>, vector<4x286xf32>
    %c0_11 = arith.constant 0 : index
    %c19 = arith.constant 19 : index
    %9 = vector.load %arg10[%c0_11, %c19] : memref<4x324xf32, #tpu.memory_space<vmem>>, vector<4x286xf32>
    %c0_12 = arith.constant 0 : index
    %c20 = arith.constant 20 : index
    %10 = vector.load %arg10[%c0_12, %c20] : memref<4x324xf32, #tpu.memory_space<vmem>>, vector<4x286xf32>
    %c0_13 = arith.constant 0 : index
    %c36 = arith.constant 36 : index
    %11 = vector.load %arg10[%c0_13, %c36] : memref<4x324xf32, #tpu.memory_space<vmem>>, vector<4x286xf32>
    %c0_14 = arith.constant 0 : index
    %c37 = arith.constant 37 : index
    %12 = vector.load %arg10[%c0_14, %c37] : memref<4x324xf32, #tpu.memory_space<vmem>>, vector<4x286xf32>
    %c0_15 = arith.constant 0 : index
    %c38 = arith.constant 38 : index
    %13 = vector.load %arg10[%c0_15, %c38] : memref<4x324xf32, #tpu.memory_space<vmem>>, vector<4x286xf32>
    %14 = tpu.concatenate %5, %6, %7, %8, %9, %10, %11, %12, %13 in 0 : vector<4x286xf32>, vector<4x286xf32>, vector<4x286xf32>, vector<4x286xf32>, vector<4x286xf32>, vector<4x286xf32>, vector<4x286xf32>, vector<4x286xf32>, vector<4x286xf32> -> vector<36x286xf32>
    %c0_16 = arith.constant 0 : index
    %c0_17 = arith.constant 0 : index
    %15 = vector.load %arg3[%c0_16, %c0_17] : memref<8x36xf32, #tpu.memory_space<vmem>>, vector<8x36xf32>
    %cst_18 = arith.constant dense<0.000000e+00> : vector<8x286xf32>
    %16 = tpu.matmul %15, %14, %cst_18 {dimension_numbers = #tpu.dot_dimension_numbers<[1], [0], [0], [1], [0, 0, 1, 1], [], []>} : vector<8x36xf32>, vector<36x286xf32>, vector<8x286xf32> -> vector<8x286xf32>
    %c0_19 = arith.constant 0 : index
    %c0_20 = arith.constant 0 : index
    %17 = vector.load %arg4[%c0_19, %c0_20] : memref<8x1xf32, #tpu.memory_space<vmem>>, vector<8x1xf32>
    %18 = vector.broadcast %17 : vector<8x1xf32> to vector<8x286xf32>
    %19 = arith.addf %16, %18 : vector<8x286xf32>
    %cst_21 = arith.constant 0.000000e+00 : f32
    %20 = vector.broadcast %cst_21 : f32 to vector<8x286xf32>
    %21 = arith.maximumf %19, %20 : vector<8x286xf32>
    %cst_22 = arith.constant 0.000000e+00 : f32
    %22 = vector.broadcast %cst_22 : f32 to vector<8x1xf32>
    %23 = vector.extract_strided_slice %21 {offsets = [0, 1], sizes = [8, 285], strides = [1, 1]} : vector<8x286xf32> to vector<8x285xf32>
    %24 = tpu.concatenate %23, %22 in 1 : vector<8x285xf32>, vector<8x1xf32> -> vector<8x286xf32>
    %25 = arith.maximumf %21, %24 : vector<8x286xf32>
    %cst_23 = arith.constant 0.000000e+00 : f32
    %26 = vector.broadcast %cst_23 : f32 to vector<8x18xf32>
    %27 = vector.extract_strided_slice %25 {offsets = [0, 18], sizes = [8, 268], strides = [1, 1]} : vector<8x286xf32> to vector<8x268xf32>
    %28 = tpu.concatenate %27, %26 in 1 : vector<8x268xf32>, vector<8x18xf32> -> vector<8x286xf32>
    %29 = arith.maximumf %25, %28 : vector<8x286xf32>
    %c0_24 = arith.constant 0 : index
    %c0_25 = arith.constant 0 : index
    %30 = vector.load %arg5[%c0_24, %c0_25] : memref<286x100xf32, #tpu.memory_space<vmem>>, vector<286x100xf32>
    %cst_26 = arith.constant dense<0.000000e+00> : vector<8x100xf32>
    %31 = tpu.matmul %29, %30, %cst_26 {dimension_numbers = #tpu.dot_dimension_numbers<[1], [0], [0], [1], [0, 0, 1, 1], [], []>} : vector<8x286xf32>, vector<286x100xf32>, vector<8x100xf32> -> vector<8x100xf32>
    %c0_27 = arith.constant 0 : index
    %c0_28 = arith.constant 0 : index
    %32 = vector.load %arg11[%c0_27, %c0_28] : memref<8x100xf32, #tpu.memory_space<vmem>>, vector<8x100xf32>
    tpu.vector_store %arg11[%c0_27, %c0_28], %31 {strides = array<i32>} : memref<8x100xf32, #tpu.memory_space<vmem>>, vector<8x100xf32>,
    %c0_29 = arith.constant 0 : index
    %c0_30 = arith.constant 0 : index
    %33 = vector.load %arg11[%c0_29, %c0_30] : memref<8x100xf32, #tpu.memory_space<vmem>>, vector<8x78xf32>
    %c0_31 = arith.constant 0 : index
    %c1_32 = arith.constant 1 : index
    %34 = vector.load %arg11[%c0_31, %c1_32] : memref<8x100xf32, #tpu.memory_space<vmem>>, vector<8x78xf32>
    %c0_33 = arith.constant 0 : index
    %c2_34 = arith.constant 2 : index
    %35 = vector.load %arg11[%c0_33, %c2_34] : memref<8x100xf32, #tpu.memory_space<vmem>>, vector<8x78xf32>
    %c0_35 = arith.constant 0 : index
    %c10 = arith.constant 10 : index
    %36 = vector.load %arg11[%c0_35, %c10] : memref<8x100xf32, #tpu.memory_space<vmem>>, vector<8x78xf32>
    %c0_36 = arith.constant 0 : index
    %c11 = arith.constant 11 : index
    %37 = vector.load %arg11[%c0_36, %c11] : memref<8x100xf32, #tpu.memory_space<vmem>>, vector<8x78xf32>
    %c0_37 = arith.constant 0 : index
    %c12 = arith.constant 12 : index
    %38 = vector.load %arg11[%c0_37, %c12] : memref<8x100xf32, #tpu.memory_space<vmem>>, vector<8x78xf32>
    %c0_38 = arith.constant 0 : index
    %c20_39 = arith.constant 20 : index
    %39 = vector.load %arg11[%c0_38, %c20_39] : memref<8x100xf32, #tpu.memory_space<vmem>>, vector<8x78xf32>
    %c0_40 = arith.constant 0 : index
    %c21 = arith.constant 21 : index
    %40 = vector.load %arg11[%c0_40, %c21] : memref<8x100xf32, #tpu.memory_space<vmem>>, vector<8x78xf32>
    %c0_41 = arith.constant 0 : index
    %c22 = arith.constant 22 : index
    %41 = vector.load %arg11[%c0_41, %c22] : memref<8x100xf32, #tpu.memory_space<vmem>>, vector<8x78xf32>
    %42 = tpu.concatenate %33, %34, %35, %36, %37, %38, %39, %40, %41 in 0 : vector<8x78xf32>, vector<8x78xf32>, vector<8x78xf32>, vector<8x78xf32>, vector<8x78xf32>, vector<8x78xf32>, vector<8x78xf32>, vector<8x78xf32>, vector<8x78xf32> -> vector<72x78xf32>
    %c0_42 = arith.constant 0 : index
    %c0_43 = arith.constant 0 : index
    %43 = vector.load %arg6[%c0_42, %c0_43] : memref<16x72xf32, #tpu.memory_space<vmem>>, vector<16x72xf32>
    %cst_44 = arith.constant dense<0.000000e+00> : vector<16x78xf32>
    %44 = tpu.matmul %43, %42, %cst_44 {dimension_numbers = #tpu.dot_dimension_numbers<[1], [0], [0], [1], [0, 0, 1, 1], [], []>} : vector<16x72xf32>, vector<72x78xf32>, vector<16x78xf32> -> vector<16x78xf32>
    %c0_45 = arith.constant 0 : index
    %c0_46 = arith.constant 0 : index
    %45 = vector.load %arg7[%c0_45, %c0_46] : memref<16x1xf32, #tpu.memory_space<vmem>>, vector<16x1xf32>
    %46 = vector.broadcast %45 : vector<16x1xf32> to vector<16x78xf32>
    %47 = arith.addf %44, %46 : vector<16x78xf32>
    %cst_47 = arith.constant 0.000000e+00 : f32
    %48 = vector.broadcast %cst_47 : f32 to vector<16x78xf32>
    %49 = arith.maximumf %47, %48 : vector<16x78xf32>
    %cst_48 = arith.constant 0.000000e+00 : f32
    %50 = vector.broadcast %cst_48 : f32 to vector<16x1xf32>
    %51 = vector.extract_strided_slice %49 {offsets = [0, 1], sizes = [16, 77], strides = [1, 1]} : vector<16x78xf32> to vector<16x77xf32>
    %52 = tpu.concatenate %51, %50 in 1 : vector<16x77xf32>, vector<16x1xf32> -> vector<16x78xf32>
    %53 = arith.maximumf %49, %52 : vector<16x78xf32>
    %cst_49 = arith.constant 0.000000e+00 : f32
    %54 = vector.broadcast %cst_49 : f32 to vector<16x10xf32>
    %55 = vector.extract_strided_slice %53 {offsets = [0, 10], sizes = [16, 68], strides = [1, 1]} : vector<16x78xf32> to vector<16x68xf32>
    %56 = tpu.concatenate %55, %54 in 1 : vector<16x68xf32>, vector<16x10xf32> -> vector<16x78xf32>
    %57 = arith.maximumf %53, %56 : vector<16x78xf32>
    %c0_50 = arith.constant 0 : index
    %c0_51 = arith.constant 0 : index
    %58 = vector.load %arg8[%c0_50, %c0_51] : memref<78x128xf32, #tpu.memory_space<vmem>>, vector<78x128xf32>
    %cst_52 = arith.constant dense<0.000000e+00> : vector<16x128xf32>
    %59 = tpu.matmul %57, %58, %cst_52 {dimension_numbers = #tpu.dot_dimension_numbers<[1], [0], [0], [1], [0, 0, 1, 1], [], []>} : vector<16x78xf32>, vector<78x128xf32>, vector<16x128xf32> -> vector<16x128xf32>
    %c0_53 = arith.constant 0 : index
    %c0_54 = arith.constant 0 : index
    %c0_55 = arith.constant 0 : index
    %60 = vector.load %arg9[%c0_53, %c0_54, %c0_55] : memref<1x16x128xf32, #tpu.memory_space<vmem>>, vector<1x16x128xf32>
    %61 = vector.shape_cast %60 : vector<1x16x128xf32> to vector<16x128xf32>
    %62 = vector.shape_cast %59 : vector<16x128xf32> to vector<1x16x128xf32>
    tpu.vector_store %arg9[%c0_53, %c0_54, %c0_55], %62 {strides = array<i32>} : memref<1x16x128xf32, #tpu.memory_space<vmem>>, vector<1x16x128xf32>,
    return
  }
  func.func @transform_0(%arg0: i32) -> (i32, i32, i32) {
    %c0_i32 = arith.constant 0 : i32
    %c0_i32_0 = arith.constant 0 : i32
    %c0_i32_1 = arith.constant 0 : i32
    return %arg0, %c0_i32, %c0_i32_0 : i32, i32, i32
  }
  func.func @transform_1(%arg0: i32) -> (i32, i32) {
    %c0_i32 = arith.constant 0 : i32
    %c0_i32_0 = arith.constant 0 : i32
    %c0_i32_1 = arith.constant 0 : i32
    return %c0_i32, %c0_i32_0 : i32, i32
  }
  func.func @transform_2(%arg0: i32) -> (i32, i32) {
    %c0_i32 = arith.constant 0 : i32
    %c0_i32_0 = arith.constant 0 : i32
    %c0_i32_1 = arith.constant 0 : i32
    return %c0_i32, %c0_i32_0 : i32, i32
  }
  func.func @transform_3(%arg0: i32) -> (i32, i32) {
    %c0_i32 = arith.constant 0 : i32
    %c0_i32_0 = arith.constant 0 : i32
    %c0_i32_1 = arith.constant 0 : i32
    return %c0_i32, %c0_i32_0 : i32, i32
  }
  func.func @transform_4(%arg0: i32) -> (i32, i32) {
    %c0_i32 = arith.constant 0 : i32
    %c0_i32_0 = arith.constant 0 : i32
    %c0_i32_1 = arith.constant 0 : i32
    return %c0_i32, %c0_i32_0 : i32, i32
  }
  func.func @transform_5(%arg0: i32) -> (i32, i32) {
    %c0_i32 = arith.constant 0 : i32
    %c0_i32_0 = arith.constant 0 : i32
    %c0_i32_1 = arith.constant 0 : i32
    return %c0_i32, %c0_i32_0 : i32, i32
  }
  func.func @transform_6(%arg0: i32) -> (i32, i32) {
    %c0_i32 = arith.constant 0 : i32
    %c0_i32_0 = arith.constant 0 : i32
    %c0_i32_1 = arith.constant 0 : i32
    return %c0_i32, %c0_i32_0 : i32, i32
  }
  func.func @transform_7(%arg0: i32) -> (i32, i32) {
    %c0_i32 = arith.constant 0 : i32
    %c0_i32_0 = arith.constant 0 : i32
    %c0_i32_1 = arith.constant 0 : i32
    return %c0_i32, %c0_i32_0 : i32, i32
  }
  func.func @transform_8(%arg0: i32) -> (i32, i32, i32) {
    %c0_i32 = arith.constant 0 : i32
    %c0_i32_0 = arith.constant 0 : i32
    %c0_i32_1 = arith.constant 0 : i32
    return %arg0, %c0_i32, %c0_i32_0 : i32, i32, i32
  }
}

</mosaic_0001>

<bundles_post_ra>
// kernel: cnn_forward.1
= control target key start
LH: loop header
LB: loop body
LE: loop exit
PB: predicated region body
PF: predicated region fallthrough
CT: control target
= control target key end

     0   :  { %13 = vsyncpa [#allocation5], 0  ;;  %s1964_s27 = smov 0   ;;  %s2291_s0 = inlined_call_operand.vmem [shape: f32[2,4,256], index: 0, kind: input, shape index: {}]   ;;  %s2292_s1 = inlined_call_operand.hbm [shape: f32[256,324], index: 1, kind: input, shape index: {}]   ;;  %s2293_s2 = inlined_call_operand.vmem [shape: f32[8,36], index: 2, kind: input, shape index: {}]   ;;  %s2294_s3 = inlined_call_operand.vmem [shape: f32[8,1], index: 3, kind: input, shape index: {}]   ;;  %s2295_s4 = inlined_call_operand.vmem [shape: f32[286,100], index: 4, kind: input, shape index: {}]   ;;  %s2296_s5 = inlined_call_operand.vmem [shape: f32[16,72], index: 5, kind: input, shape index: {}]   ;;  %s2297_s6 = inlined_call_operand.vmem [shape: f32[16,1], index: 6, kind: input, shape index: {}]   ;;  %s2298_s7 = inlined_call_operand.vmem [shape: f32[78,128], index: 7, kind: input, shape index: {}]   ;;  %s2299_s8 = inlined_call_operand.vmem [shape: f32[2,16,128], index: 8, kind: output, shape index: {}]  }
   0x1 LB: > { %s1970_s28 = sadd.s32 4294967295, %s1896_s27   ;;  %p1384_p0 = scmp.ge.s32.totalorder %s1896_s27, 1  ;;  %s1896_s27 = sphi %s1964_s27, %s19_s27  }
   0x2   : > { %p223_p1 = scmp.lt.s32.totalorder %s1896_s27, 3  ;;  %s1898_s29 = smov [#allocation4]  }
   0x3   : > { %s235_s30 = sshll.u32 %s1898_s29, 4  ;;  %p2300_p3 = scmp.eq.s32.totalorder %s1970_s28, 0  ;;  %s236_s30 = int_to_ptr.vmem [resolvable:$true] %s235_s30 }
   0x4   : > { %p1974_p2 = pnand %p1384_p0, %p223_p1  ;;  %s1858_s13 = scalar_lea.hbm %s2292_s1, 12288 }
   0x5   : > { %p1859_p6 = scmp.ne.s32.totalorder %s2292_s1, %s1858_s13  ;;  %p1865_p10 = scmp.lt.u32.totalorder %s1858_s13, %s2292_s1 }
   0x6   : > { %s2302_s9 = scalar_select %p1974_p2, 1, 0 }
   0x7   : > { %p1772_p4 = pneg %p1974_p2 }
   0x9   : > { %p1983_p5 = pnand %p2300_p3, %p1772_p4 }
   0xb   : > { %p1860_p7 = pneg %p1983_p5 }
   0xd   : > { %p1861_p8 = pnand %p1860_p7, %p1859_p6 }
   0xf   : > { %p1862_p9 = pneg %p1861_p8 }
  0x11   : > { %p1867_p11 = pnand %p1865_p10, %p1862_p9 }
  0x13   : > { %1870 = shalt.err (!%p1867_p11)
}
  0x14   : > { %s1871_s18 = scalar_lea.vmem %s236_s30, 12288  ;;  %p1879_p1 = scmp.lt.s32.totalorder %s236_s30, %s236_s30 }
  0x15   : > { %p1872_p12 = scmp.ne.s32.totalorder %s236_s30, %s1871_s18  ;;  %p1880_p4 = scmp.lt.s32.totalorder %s1871_s18, %s1871_s18 }
  0x17   : > { %p1874_p13 = pnand %p1872_p12, %p1860_p7  ;;  %p1881_p3 = por %p1880_p4, %p1879_p1 }
  0x19   : > { %p1875_p0 = pneg %p1874_p13 }
  0x1b   : > { %p1882_p2 = pnand %p1881_p3, %p1875_p0 }
  0x1d   : > { %1885 = shalt.err (!%p1882_p2)
}
  0x1e   : > { %s1899_s19 = smov 384   ;;  %s1900_s20 = smov 24  }
  0x1f   : > { %1775 = dma.hbm_to_vmem [thread:$0]  (!%p1983_p5), %s2292_s1, 12288, %s236_s30, [#allocation5], %s1899_s19, %s1899_s19, %s1900_s20  }
  0x20   : > { %p2304_p6 = scmp.ne.s32.totalorder %s2302_s9, 0 }
  0x21   : > { %p2305_p8 = scmp.eq.s32.totalorder (!%p2304_p6), %s1970_s28, 0 }
  0x22   : > { %277 = sbr.rel (%p2304_p6) target bundleno = 1967 (0x7af), region = 52 }
  0x29   : > { %1891 = dma.done.wait (%p2305_p8), [#allocation5], 12288   ;;  %p2306_p7 = pmov %p2305_p8 }
  0x2a   : > { %v323_v0 = vld [vmem:[#allocation4 + $0x8] sm:$0xff]  ;;  %v326_v1 = vld [vmem:[#allocation4 + $0x20] sm:$0xff]  ;;  %v325_v4 = vld [vmem:[#allocation4 + $0x18] sm:$0xff]  ;;  %p311_p2 = scmp.lt.s32.totalorder %s1970_s28, 1  ;;  %vm567_vm0 = vcmask 551936   ;;  %s1901_s29 = smov 110  }
  0x2b   : > { %1893 = vsyncadd (%p2306_p7), [#allocation5], 4294955008  ;;  %v322_v2 = vld [vmem:[#allocation4] sm:$0xff]  ;;  %v1581_v3 = vpack.c.bf16 %v326_v1, %v323_v0  ;;  %v329_v5 = vld [vmem:[#allocation4 + $0x38] sm:$0xff]  ;;  %s1902_s30 = smov 127   ;;  %s1903_s9 = smov 108  }
  0x2c   : > { %v332_v6 = vld [vmem:[#allocation4 + $0x50] sm:$0xff]  ;;  %v1583_v7 = vpack.c.bf16 %v325_v4, %v322_v2  ;;  %v331_v10 = vld [vmem:[#allocation4 + $0x48] sm:$0xff]  ;;  %v338_v12 = vld [vmem:[#allocation4 + $0x80] sm:$0xff]  ;;  %s2310_s28 = smov (!%p311_p2, %s1970_s28), 1  ;;  %s1904_s10 = smov 126   ;;  %vm1909_vm1 = vmmov 0  }
  0x2d   : > { %v1585_v8 = vpack.c.bf16 %v332_v6, %v329_v5  ;;  %v328_v9 = vld [vmem:[#allocation4 + $0x30] sm:$0xff]  ;;  %v335_v11 = vld [vmem:[#allocation4 + $0x68] sm:$0xff]  ;;  %1582 = vmatprep.subr.bf16.mxu0 %v1581_v3  ;;  %v334_v15 = vld [vmem:[#allocation4 + $0x60] sm:$0xff]  ;;  %s1407_s23 = sshll.u32 %s2310_s28, 3  ;;  %s1906_s11 = smov 91   ;;  %vm583_vm2 = vcmask 1039360  }
  0x2e   : > { %1584 = vmatpush1.bf16.msra.mxu0 %v1583_v7  ;;  %v1587_v13 = vpack.c.bf16 %v331_v10, %v328_v9  ;;  %v1589_v14 = vpack.c.bf16 %v338_v12, %v335_v11  ;;  %v337_v16 = vld [vmem:[#allocation4 + $0x78] sm:$0xff]  ;;  %v344_v18 = vld [vmem:[#allocation4 + $0xb0] sm:$0xff]  ;;  %v343_v22 = vld [vmem:[#allocation4 + $0xa8] sm:$0xff]  ;;  %s315_s26 = scalar_lea.vmem %s2291_s0, %s1407_s23  ;;  %s1907_s12 = smov 109   ;;  %vm670_vm3 = vcmask 1043456   ;;  %vm607_vm4 = vcmask 900096  }
  0x2f   : > { %1586 = vmatprep.subr.bf16.mxu0 %v1585_v8  ;;  %v341_v17 = vld [vmem:[#allocation4 + $0x98] sm:$0xff]  ;;  %v1591_v19 = vpack.c.bf16 %v337_v16, %v334_v15  ;;  %v340_v21 = vld [vmem:[#allocation4 + $0x90] sm:$0xff]  ;;  %v347_v23 = vld [vmem:[#allocation4 + $0xc8] sm:$0xff]  ;;  %s1908_s13 = smov 92   ;;  %s1912_s14 = smov 90   ;;  %vm595_vm5 = vcmask 1031168  }
  0x30   : > { %v1593_v20 = vpack.c.bf16 %v344_v18, %v341_v17  ;;  %v350_v24 = vld [vmem:[#allocation4 + $0xe0] sm:$0xff]  ;;  %v372_v25 = vld [vmem:[#allocation4 + $0x190] sm:$0xff]  ;;  %v375_v26 = vld [vmem:[#allocation4 + $0x1a8] sm:$0xff]  ;;  %v1595_v29 = vpack.c.bf16 %v343_v22, %v340_v21  ;;  %vm619_vm6 = vcmask 891904   ;;  %vm631_vm7 = vcmask 883712   ;;  %s1917_s15 = smov 106  }
  0x31   : > { %v324_v27 = vld [vmem:[#allocation4 + $0x10] sm:$0xff]  ;;  %v327_v28 = vld [vmem:[#allocation4 + $0x28] sm:$0xff]  ;;  %v346_v30 = vld [vmem:[#allocation4 + $0xc0] sm:$0xff]  ;;  %v1645_v32 = vpack.c.bf16 %v375_v26, %v372_v25  ;;  %v1597_v34 = vpack.c.bf16 %v350_v24, %v347_v23  ;;  %vm655_vm8 = vcmask 744448   ;;  %vm643_vm9 = vcmask 752640  }
  0x32   : > { %1588 = vmatpush1.bf16.msra.mxu0 %v1587_v13  ;;  %v349_v31 = vld [vmem:[#allocation4 + $0xd8] sm:$0xff]  ;;  %v1647_v33 = vpack.c.bf16 %v327_v28, %v324_v27  ;;  %v378_v36 = vld [vmem:[#allocation4 + $0x1c0] sm:$0xff]  ;;  %v356_v38 = vld [vmem:[#allocation4 + $0x110] sm:$0xff]  ;;  %vm667_vm10 = vcmask 736256   ;;  %vm690_vm11 = vcmask 293888   ;;  %vm922_vm12 = vcmask 1045504  }
  0x33   : > { %1590 = vmatprep.subr.bf16.mxu0 %v1589_v14  ;;  %v353_v35 = vld [vmem:[#allocation4 + $0xf8] sm:$0xff]  ;;  %1646 = vmatprep.subr.bf16.mxu1 %v1645_v32  ;;  %v330_v40 = vld [vmem:[#allocation4 + $0x40] sm:$0xff]  ;;  %v1599_v43 = vpack.c.bf16 %v349_v31, %v346_v30  ;;  %v384_v44 = vld [vmem:[#allocation4 + $0x1f0] sm:$0xff]  ;;  %vm1913_vm13 = vmmov 1   ;;  %vm858_vm15 = vcmask 236544  }
  0x34   : > { %v381_v37 = vld [vmem:[#allocation4 + $0x1d8] sm:$0xff]  ;;  %1648 = vmatpush3.bf16.msra.mxu1 %v1647_v33  ;;  %v387_v45 = vld [vmem:[#allocation4 + $0x208] sm:$0xff]  ;;  %v336_v46 = vld [vmem:[#allocation4 + $0x70] sm:$0xff]  ;;  %v1601_v47 = vpack.c.bf16 %v356_v38, %v353_v35 }
  0x35   : > { %v1649_v39 = vpack.c.bf16 %v381_v37, %v378_v36  ;;  %v333_v41 = vld [vmem:[#allocation4 + $0x58] sm:$0xff]  ;;  %v352_v48 = vld [vmem:[#allocation4 + $0xf0] sm:$0xff]  ;;  %v355_v49 = vld [vmem:[#allocation4 + $0x108] sm:$0xff]  ;;  %v1653_v50 = vpack.c.bf16 %v387_v45, %v384_v44 }
  0x36   : > { %1592 = vmatpush1.bf16.msra.mxu0 %v1591_v19  ;;  %v1651_v42 = vpack.c.bf16 %v333_v41, %v330_v40  ;;  %v339_v51 = vld [vmem:[#allocation4 + $0x88] sm:$0xff]  ;;  %v362_v53 = vld [vmem:[#allocation4 + $0x140] sm:$0xff]  ;;  %v393_v56 = vld [vmem:[#allocation4 + $0x238] sm:$0xff]  ;;  %v1603_v57 = vpack.c.bf16 %v355_v49, %v352_v48 }
  0x37   : > { %1594 = vmatprep.subr.bf16.mxu0 %v1593_v20  ;;  %1650 = vmatprep.subr.bf16.mxu1 %v1649_v39  ;;  %v359_v52 = vld [vmem:[#allocation4 + $0x128] sm:$0xff]  ;;  %v390_v54 = vld [vmem:[#allocation4 + $0x220] sm:$0xff]  ;;  %v1655_v55 = vpack.c.bf16 %v339_v51, %v336_v46  ;;  %v345_v61 = vld [vmem:[#allocation4 + $0xb8] sm:$0xff] }
  0x38   : > { %1652 = vmatpush3.bf16.msra.mxu1 %v1651_v42  ;;  %v358_v58 = vld [vmem:[#allocation4 + $0x120] sm:$0xff]  ;;  %v1657_v59 = vpack.c.bf16 %v393_v56, %v390_v54  ;;  %v1605_v62 = vpack.c.bf16 %v362_v53, %v359_v52  ;;  %v361_v63 = vld [vmem:[#allocation4 + $0x138] sm:$0xff]  ;;  %v396_v0 = vld [vmem:[#allocation4 + $0x250] sm:$0xff] }
  0x39   : > { %1654 = vmatprep.subr.bf16.mxu1 %v1653_v50  ;;  %v342_v60 = vld [vmem:[#allocation4 + $0xa0] sm:$0xff]  ;;  %v399_v1 = vld [vmem:[#allocation4 + $0x268] sm:$0xff]  ;;  %v365_v2 = vld [vmem:[#allocation4 + $0x158] sm:$0xff]  ;;  %v1607_v5 = vpack.c.bf16 %v361_v63, %v358_v58 }
  0x3a   : > { %1596 = vmatpush1.bf16.msra.mxu0 %v1595_v29  ;;  %v368_v3 = vld [vmem:[#allocation4 + $0x170] sm:$0xff]  ;;  %v1659_v4 = vpack.c.bf16 %v345_v61, %v342_v60  ;;  %v1661_v7 = vpack.c.bf16 %v399_v1, %v396_v0  ;;  %v351_v9 = vld [vmem:[#allocation4 + $0xe8] sm:$0xff]  ;;  %v402_v12 = vld [vmem:[#allocation4 + $0x280] sm:$0xff] }
  0x3b   : > { %1598 = vmatprep.subr.bf16.mxu0 %v1597_v34  ;;  %v364_v6 = vld [vmem:[#allocation4 + $0x150] sm:$0xff]  ;;  %v1609_v10 = vpack.c.bf16 %v368_v3, %v365_v2  ;;  %v367_v11 = vld [vmem:[#allocation4 + $0x168] sm:$0xff]  ;;  %v405_v13 = vld [vmem:[#allocation4 + $0x298] sm:$0xff] }
  0x3c   : > { %1656 = vmatpush3.bf16.msra.mxu1 %v1655_v55  ;;  %v348_v8 = vld [vmem:[#allocation4 + $0xd0] sm:$0xff]  ;;  %v371_v14 = vld [vmem:[#allocation4 + $0x188] sm:$0xff]  ;;  %v374_v15 = vld [vmem:[#allocation4 + $0x1a0] sm:$0xff]  ;;  %v1611_v17 = vpack.c.bf16 %v367_v11, %v364_v6  ;;  %v1665_v19 = vpack.c.bf16 %v405_v13, %v402_v12 }
  0x3d   : > { %1658 = vmatprep.subr.bf16.mxu1 %v1657_v59  ;;  %v1663_v16 = vpack.c.bf16 %v351_v9, %v348_v8  ;;  %v370_v18 = vld [vmem:[#allocation4 + $0x180] sm:$0xff]  ;;  %v357_v21 = vld [vmem:[#allocation4 + $0x118] sm:$0xff]  ;;  %v1613_v22 = vpack.c.bf16 %v374_v15, %v371_v14  ;;  %v408_v24 = vld [vmem:[#allocation4 + $0x2b0] sm:$0xff] }
  0x3e   : > { %1600 = vmatpush1.bf16.msra.mxu0 %v1599_v43  ;;  %v354_v20 = vld [vmem:[#allocation4 + $0x100] sm:$0xff]  ;;  %v373_v23 = vld [vmem:[#allocation4 + $0x198] sm:$0xff]  ;;  %v411_v25 = vld [vmem:[#allocation4 + $0x2c8] sm:$0xff] }
  0x3f   : > { %1602 = vmatprep.subr.bf16.mxu0 %v1601_v47  ;;  %v377_v26 = vld [vmem:[#allocation4 + $0x1b8] sm:$0xff]  ;;  %v380_v27 = vld [vmem:[#allocation4 + $0x1d0] sm:$0xff]  ;;  %v1667_v28 = vpack.c.bf16 %v357_v21, %v354_v20  ;;  %v1615_v30 = vpack.c.bf16 %v373_v23, %v370_v18  ;;  %v1669_v32 = vpack.c.bf16 %v411_v25, %v408_v24  ;;  %v363_v34 = vld [vmem:[#allocation4 + $0x148] sm:$0xff] }
  0x40   : > { %1660 = vmatpush3.bf16.msra.mxu1 %v1659_v4  ;;  %v2019_v29 = vld [vmem:[%s315_s26] sm:$0xff]  ;;  %v1617_v36 = vpack.c.bf16 %v380_v27, %v377_v26  ;;  %v414_v38 = vld [vmem:[#allocation4 + $0x2e0] sm:$0xff]  ;;  %v417_v39 = vld [vmem:[#allocation4 + $0x2f8] sm:$0xff]  ;;  %v1905_v27 = vmov 0.0|0.0  }
  0x41   : > { %1662 = vmatprep.subr.bf16.mxu1 %v1661_v7  ;;  %v376_v31 = vld [vmem:[#allocation4 + $0x1b0] sm:$0xff]  ;;  %v419_v35 = vcombine.high %v2019_v29, %v2019_v29  ;;  %v379_v37 = vld [vmem:[#allocation4 + $0x1c8] sm:$0xff]  ;;  %v386_v41 = vld [vmem:[#allocation4 + $0x200] sm:$0xff]  ;;  %v1673_v44 = vpack.c.bf16 %v417_v39, %v414_v38 }
  0x42   : > { %1604 = vmatpush1.bf16.msra.mxu0 %v1603_v57  ;;  %v360_v33 = vld [vmem:[#allocation4 + $0x130] sm:$0xff]  ;;  %v383_v40 = vld [vmem:[#allocation4 + $0x1e8] sm:$0xff]  ;;  %v1619_v43 = vpack.c.bf16 %v379_v37, %v376_v31  ;;  %v366_v45 = vld [vmem:[#allocation4 + $0x160] sm:$0xff]  ;;  %v1910_v31 = vmov 0.0  }
  0x43   : > { %1606 = vmatprep.subr.bf16.mxu0 %v1605_v62  ;;  %556 = vmatprep.mubr.f32.mxu1 %v419_v35  ;;  %v1671_v42 = vpack.c.bf16 %v363_v34, %v360_v33  ;;  %v369_v46 = vld [vmem:[#allocation4 + $0x178] sm:$0xff]  ;;  %v1621_v47 = vpack.c.bf16 %v386_v41, %v383_v40  ;;  %v382_v48 = vld [vmem:[#allocation4 + $0x1e0] sm:$0xff]  ;;  %v392_v51 = vld [vmem:[#allocation4 + $0x230] sm:$0xff] }
  0x44   : > { %1664 = vmatpush3.bf16.msra.mxu1 %v1663_v16  ;;  %485 = vmatprep.mubr.f32.mxu0 %v419_v35  ;;  %v385_v49 = vld [vmem:[#allocation4 + $0x1f8] sm:$0xff]  ;;  %v1675_v52 = vpack.c.bf16 %v369_v46, %v366_v45  ;;  %v388_v55 = vld [vmem:[#allocation4 + $0x210] sm:$0xff]  ;;  %v391_v56 = vld [vmem:[#allocation4 + $0x228] sm:$0xff] }
  0x45   : > { %1666 = vmatprep.subr.bf16.mxu1 %v1665_v19  ;;  %v389_v50 = vld [vmem:[#allocation4 + $0x218] sm:$0xff]  ;;  %v1623_v53 = vpack.c.bf16 %v385_v49, %v382_v48  ;;  %v395_v57 = vld [vmem:[#allocation4 + $0x248] sm:$0xff]  ;;  %v398_v58 = vld [vmem:[#allocation4 + $0x260] sm:$0xff]  ;;  %v1627_v59 = vpack.c.bf16 %v391_v56, %v388_v55 }
  0x46   : > { %1608 = vmatpush1.bf16.msra.mxu0 %v1607_v5  ;;  %v1625_v54 = vpack.c.bf16 %v392_v51, %v389_v50  ;;  %v1629_v60 = vpack.c.bf16 %v398_v58, %v395_v57  ;;  %v394_v61 = vld [vmem:[#allocation4 + $0x240] sm:$0xff]  ;;  %v397_v62 = vld [vmem:[#allocation4 + $0x258] sm:$0xff]  ;;  %v404_v0 = vld [vmem:[#allocation4 + $0x290] sm:$0xff] }
  0x47   : > { %1610 = vmatprep.subr.bf16.mxu0 %v1609_v10  ;;  %v401_v63 = vld [vmem:[#allocation4 + $0x278] sm:$0xff]  ;;  %v1631_v1 = vpack.c.bf16 %v397_v62, %v394_v61  ;;  %v400_v3 = vld [vmem:[#allocation4 + $0x270] sm:$0xff]  ;;  %v403_v4 = vld [vmem:[#allocation4 + $0x288] sm:$0xff] }
  0x48   : > { %1668 = vmatpush3.bf16.msra.mxu1 %v1667_v28  ;;  %v1633_v2 = vpack.c.bf16 %v404_v0, %v401_v63  ;;  %v407_v5 = vld [vmem:[#allocation4 + $0x2a8] sm:$0xff]  ;;  %v410_v6 = vld [vmem:[#allocation4 + $0x2c0] sm:$0xff]  ;;  %v1635_v7 = vpack.c.bf16 %v403_v4, %v400_v3  ;;  %v409_v10 = vld [vmem:[#allocation4 + $0x2b8] sm:$0xff] }
  0x49   : > { %1670 = vmatprep.subr.bf16.mxu1 %v1669_v32  ;;  %v1637_v8 = vpack.c.bf16 %v410_v6, %v407_v5  ;;  %v406_v9 = vld [vmem:[#allocation4 + $0x2a0] sm:$0xff]  ;;  %v413_v11 = vld [vmem:[#allocation4 + $0x2d8] sm:$0xff]  ;;  %v416_v12 = vld [vmem:[#allocation4 + $0x2f0] sm:$0xff]  ;;  %v1911_v32 = vmov 0  }
  0x4a   : > { %1612 = vmatpush1.bf16.msra.mxu0 %v1611_v17  ;;  %v1639_v13 = vpack.c.bf16 %v409_v10, %v406_v9  ;;  %v1641_v14 = vpack.c.bf16 %v416_v12, %v413_v11  ;;  %v412_v15 = vld [vmem:[#allocation4 + $0x2d0] sm:$0xff]  ;;  %v415_v16 = vld [vmem:[#allocation4 + $0x2e8] sm:$0xff]  ;;  %1842 = vset.pattern.permute.xlu1 %v1911_v32  ;;  %vm2174_vm14 = vmpackc.low %vm922_vm12, %vm1913_vm13 }
  0x4b   : > { %1614 = vmatprep.subr.bf16.mxu0 %v1613_v22  ;;  %v1643_v17 = vpack.c.bf16 %v415_v16, %v412_v15  ;;  %1853 = vset.pattern.permute.xlu0 %v1911_v32  ;;  %v684_v33 = vld [vmem:[%s2294_s3] sm:$0xff] }
  0x4c   : > { %1672 = vmatpush3.bf16.msra.mxu1 %v1671_v42 }
  0x4d   : > { %1674 = vmatprep.subr.bf16.mxu1 %v1673_v44 }
  0x4e   : > { %1616 = vmatpush1.bf16.msra.mxu0 %v1615_v30 }
  0x4f   : > { %1618 = vmatprep.subr.bf16.mxu0 %v1617_v36 }
  0x50   : > { %1676 = vmatpush3.bf16.msra.mxu1 %v1675_v52 }
  0x51   : > { %1685 = vmatprep.subr.bf16.mxu1 %v1905_v27 }
  0x52   : > { %1620 = vmatpush1.bf16.msra.mxu0 %v1619_v43 }
  0x53   : > { %1622 = vmatprep.subr.bf16.mxu0 %v1621_v47  ;;  %557 = vmatmul.mubr.f32.vlgmr.msra.gmra.mrb[0].mxu1 %v2019_v29 }
  0x54   : > { %1523 = vmatprep.mubr.msk.f32.mxu1 %vm1909_vm1, %v1910_v31 }
  0x56   : > { %1624 = vmatpush1.bf16.msra.mxu0 %v1623_v53 }
  0x57   : > { %1626 = vmatprep.subr.bf16.mxu0 %v1625_v54 }
  0x5a   : > { %1628 = vmatpush1.bf16.msra.mxu0 %v1627_v59 }
  0x5b   : > { %1630 = vmatprep.subr.bf16.mxu0 %v1629_v60 }
  0x5e   : > { %1632 = vmatpush1.bf16.msra.mxu0 %v1631_v1 }
  0x5f   : > { %1634 = vmatprep.subr.bf16.mxu0 %v1633_v2 }
  0x62   : > { %1636 = vmatpush1.bf16.msra.mxu0 %v1635_v7 }
  0x63   : > { %1638 = vmatprep.subr.bf16.mxu0 %v1637_v8 }
  0x66   : > { %1640 = vmatpush1.bf16.msra.mxu0 %v1639_v13 }
  0x67   : > { %1642 = vmatprep.subr.bf16.mxu0 %v1641_v14 }
  0x6a   : > { %1644 = vmatpush1.bf16.msra.mxu0 %v1643_v17 }
  0x6d   : > { %486 = vmatmul.mubr.f32.vlgmr.msra.gmra.mrb[0].mxu0 %v2019_v29 }
  0x6e   : > { %764 = vmatprep.mubr.f32.mxu0 %v1910_v31 }
 0x126   : > { %v1441_v18 = vpop.f32.mrb[0].mxu1 }
 0x127   : > { %v1442_v19 = vpop.f32.mrb[1].mxu1 }
 0x128   : > { %v1443_v20 = vadd.f32 %v1442_v19, %v1441_v18 }
 0x12a   : > { %568 = vst.msk [vmem:[#allocation2 + $0x8] sm:$0xf] %vm567_vm0, %v1443_v20  ;;  %vm877_vm0 = vcmask 97280  }
 0x131   : > { %v2025_v21 = vld [vmem:[#allocation2 + $0x8] sm:$0xf] }
 0x132   : > { %v576_v23 = vcombine.low %v2025_v21, %v2025_v21 }
 0x140   : > { %v487_v22 = vpop.f32.mrb[0].mxu0 }
 0x141   : > { %v489_v24 = vpop.f32.mrb[1].mxu0  ;;  %v1856_v28 = vcombine.low %v487_v22, %v487_v22 }
 0x142   : > { %v2029_v25 = vcombine.low %v487_v22, %v489_v24  ;;  %v1857_v29 = vcombine.low %v489_v24, %v489_v24 }
 0x144   : > { %v1812_v26 = vpack.i.bf16 %v576_v23, %v2029_v25  ;;  %v1827_v30 = vpack.i.bf16 %v2025_v21, %v1857_v29 }
 0x146   : > { %1813 = vrot.lane.b32.xlu1 %v1812_v26, %s1901_s29  ;;  %1808 = vrot.lane.b32.xlu0 %v1812_v26, %s1902_s30 }
 0x14a   : > { %1818 = vrot.lane.b32.xlu1 %v1812_v26, %s1903_s9  ;;  %589 = vrot.lane.b32.xlu0 %v2029_v25, %s1904_s10 }
 0x14e   : > { %1823 = vrot.lane.b32.xlu1 %v1812_v26, %s1906_s11  ;;  %613 = vrot.lane.b32.xlu0 %v2029_v25, %s1907_s12 }
 0x152   : > { %637 = vrot.lane.b32.xlu0 %v2029_v25, %s1908_s13  ;;  %577 = vrot.lane.b32.xlu1 %v1856_v28, %s1902_s30 }
 0x156   : > { %601 = vrot.lane.b32.xlu1 %v1856_v28, %s1901_s29  ;;  %1828 = vrot.lane.b32.xlu0 %v1827_v30, %s1904_s10 }
 0x15a   : > { %625 = vrot.lane.b32.xlu1 %v1856_v28, %s1903_s9  ;;  %1833 = vrot.lane.b32.xlu0 %v1827_v30, %s1907_s12 }
 0x15e   : > { %649 = vrot.lane.b32.xlu1 %v1856_v28, %s1906_s11  ;;  %1838 = vrot.lane.b32.xlu0 %v1827_v30, %s1908_s13  ;;  %s1915_s11 = smov 118  }
 0x162   : > { %665 = vrot.lane.b32.xlu1 %v2025_v21, %s1912_s14  ;;  %663 = vrot.lane.b32.xlu0 %v1857_v29, %s1912_s14 }
 0x166   : > { %661 = vrot.lane.b32.xlu0 %v2029_v25, %s1912_s14  ;;  %687 = vperm.xlu1 %1842, %v684_v33   ;;  %s1916_s14 = smov 116  }
 0x1b8   : > { %v1814_v34 = vpop.permute.xlu1 %1813  ;;  %v1809_v35 = vpop.permute.xlu0 %1808 }
 0x1b9   : > { %v1811_v40 = vunpack.i.h.bf16 %v1809_v35  ;;  %v1810_v41 = vunpack.i.l.bf16 %v1809_v35  ;;  %v1816_v44 = vunpack.i.h.bf16 %v1814_v34  ;;  %v1815_v45 = vunpack.i.l.bf16 %v1814_v34 }
 0x1bb   : > { %v585_v46 = vsel %vm583_vm2, %v1810_v41, %v1811_v40  ;;  %v673_v49 = vsel %vm670_vm3, %v2025_v21, %v1811_v40  ;;  %v609_v54 = vsel %vm607_vm4, %v1815_v45, %v1816_v44 }
 0x1bc   : > { %v1819_v36 = vpop.permute.xlu1 %1818  ;;  %v590_v37 = vpop.permute.xlu0 %589  ;;  %v672_v55 = vsel %vm670_vm3, %v1857_v29, %v585_v46 }
 0x1bd   : > { %v1821_v52 = vunpack.i.h.bf16 %v1819_v36  ;;  %v1820_v60 = vunpack.i.l.bf16 %v1819_v36  ;;  %v683_v36 = vld [vmem:[%s2293_s2] sm:$0xff] }
 0x1bf   : > { %v633_v12 = vsel %vm631_vm7, %v1820_v60, %v1821_v52 }
 0x1c0   : > { %v1824_v38 = vpop.permute.xlu1 %1823  ;;  %v614_v39 = vpop.permute.xlu0 %613 }
 0x1c1   : > { %v1826_v6 = vunpack.i.h.bf16 %v1824_v38  ;;  %v1825_v7 = vunpack.i.l.bf16 %v1824_v38 }
 0x1c3   : > { %v657_v18 = vsel %vm655_vm8, %v1825_v7, %v1826_v6 }
 0x1c4   : > { %v638_v42 = vpop.permute.xlu0 %637  ;;  %v578_v43 = vpop.permute.xlu1 %577 }
 0x1c5   : > { %v584_v53 = vsel %vm583_vm2, %v578_v43, %v1810_v41 }
 0x1c6   : > { %v671_v2 = vsel %vm670_vm3, %v2029_v25, %v584_v53  ;;  %v901_v53 = vld [vmem:[%s2295_s4 + $0x98] sm:$0xff] }
 0x1c8   : > { %v602_v47 = vpop.permute.xlu1 %601  ;;  %v1829_v48 = vpop.permute.xlu0 %1828 }
 0x1c9   : > { %v1831_v50 = vunpack.i.h.bf16 %v1829_v48  ;;  %v1830_v51 = vunpack.i.l.bf16 %v1829_v48  ;;  %v608_v56 = vsel %vm607_vm4, %v602_v47, %v1815_v45  ;;  %v898_v47 = vld [vmem:[%s2295_s4 + $0x80] sm:$0xff] }
 0x1ca   : > { %v882_v48 = vld [vmem:[%s2295_s4] sm:$0xff] }
 0x1cb   : > { %v676_v57 = vsel %vm670_vm3, %v1831_v50, %v1816_v44  ;;  %v596_v58 = vsel %vm595_vm5, %v590_v37, %v1830_v51  ;;  %v597_v59 = vsel %vm595_vm5, %v1830_v51, %v1831_v50  ;;  %v883_v51 = vld [vmem:[%s2295_s4 + $0x8] sm:$0xff]  ;;  %vm1213_vm5 = vcmask 556032  }
 0x1cc   : > { %v1686_v61 = vpack.c.bf16 %v676_v57, %v673_v49  ;;  %v626_v62 = vpop.permute.xlu1 %625  ;;  %v1834_v63 = vpop.permute.xlu0 %1833  ;;  %v675_v0 = vsel %vm670_vm3, %v597_v59, %v609_v54  ;;  %v674_v1 = vsel %vm670_vm3, %v596_v58, %v608_v56  ;;  %v884_v57 = vld [vmem:[%s2295_s4 + $0x10] sm:$0xff]  ;;  %v885_v58 = vld [vmem:[%s2295_s4 + $0x18] sm:$0xff]  ;;  %v902_v59 = vld [vmem:[%s2295_s4 + $0xa0] sm:$0xff] }
 0x1cd   : > { %v1836_v3 = vunpack.i.h.bf16 %v1834_v63  ;;  %v1835_v4 = vunpack.i.l.bf16 %v1834_v63  ;;  %v1677_v5 = vpack.c.bf16 %v675_v0, %v672_v55  ;;  %v1679_v8 = vpack.c.bf16 %v674_v1, %v671_v2  ;;  %v886_v63 = vld [vmem:[%s2295_s4 + $0x20] sm:$0xff]  ;;  %v887_v1 = vld [vmem:[%s2295_s4 + $0x28] sm:$0xff] }
 0x1ce   : > { %1687 = vmatpush3.bf16.msra.mxu1 %v1686_v61  ;;  %v632_v16 = vsel %vm631_vm7, %v626_v62, %v1820_v60  ;;  %v1693_v55 = vpack.c.bf16 %v883_v51, %v882_v48  ;;  %v903_v60 = vld [vmem:[%s2295_s4 + $0xa8] sm:$0xff]  ;;  %v1697_v62 = vpack.c.bf16 %v885_v58, %v884_v57  ;;  %v914_v2 = vld [vmem:[%s2295_s4 + $0x100] sm:$0xff] }
 0x1cf   : > { %v621_v9 = vsel %vm619_vm6, %v1835_v4, %v1836_v3  ;;  %1678 = vmatprep.subr.bf16.mxu0 %v1677_v5  ;;  %1688 = vmatprep.subr.bf16.mxu1 %v1905_v27  ;;  %v620_v13 = vsel %vm619_vm6, %v614_v39, %v1835_v4  ;;  %v679_v17 = vsel %vm670_vm3, %v1836_v3, %v1821_v52  ;;  %v900_v52 = vld [vmem:[%s2295_s4 + $0x90] sm:$0xff]  ;;  %v915_v3 = vld [vmem:[%s2295_s4 + $0x108] sm:$0xff]  ;;  %v905_v5 = vld [vmem:[%s2295_s4 + $0xb8] sm:$0xff]  ;;  %vm1228_vm6 = vcmask 637952  }
 0x1d0   : > { %v650_v10 = vpop.permute.xlu1 %649  ;;  %v1839_v11 = vpop.permute.xlu0 %1838  ;;  %1680 = vmatpush1.bf16.msra.mxu0 %v1679_v8  ;;  %v678_v19 = vsel %vm670_vm3, %v621_v9, %v633_v12  ;;  %v677_v28 = vsel %vm670_vm3, %v620_v13, %v632_v16  ;;  %v1695_v56 = vpack.c.bf16 %v901_v53, %v900_v52  ;;  %v1699_v0 = vpack.c.bf16 %v903_v60, %v902_v59  ;;  %v904_v4 = vld [vmem:[%s2295_s4 + $0xb0] sm:$0xff]  ;;  %v907_v12 = vld [vmem:[%s2295_s4 + $0xc8] sm:$0xff] }
 0x1d1   : > { %v1841_v14 = vunpack.i.h.bf16 %v1839_v11  ;;  %v1840_v15 = vunpack.i.l.bf16 %v1839_v11  ;;  %v656_v20 = vsel %vm655_vm8, %v650_v10, %v1825_v7  ;;  %v1701_v7 = vpack.c.bf16 %v887_v1, %v886_v63  ;;  %v888_v9 = vld [vmem:[%s2295_s4 + $0x30] sm:$0xff]  ;;  %v889_v10 = vld [vmem:[%s2295_s4 + $0x38] sm:$0xff]  ;;  %v906_v11 = vld [vmem:[%s2295_s4 + $0xc0] sm:$0xff] }
 0x1d2   : > { %v1703_v8 = vpack.c.bf16 %v905_v5, %v904_v4  ;;  %v1705_v13 = vpack.c.bf16 %v889_v10, %v888_v9  ;;  %v916_v16 = vld [vmem:[%s2295_s4 + $0x110] sm:$0xff]  ;;  %v1094_v4 = vld [vmem:[%s2296_s5] sm:$0xff]  ;;  %v1097_v5 = vld [vmem:[%s2297_s6 + $0x8] sm:$0xff] }
 0x1d3   : > { %v682_v21 = vsel %vm670_vm3, %v1841_v14, %v1826_v6  ;;  %v644_v22 = vsel %vm643_vm9, %v638_v42, %v1840_v15  ;;  %v645_v23 = vsel %vm643_vm9, %v1840_v15, %v1841_v14  ;;  %v1724_v6 = vpack.c.bf16 %v915_v3, %v914_v2  ;;  %v890_v15 = vld [vmem:[%s2295_s4 + $0x40] sm:$0xff] }
 0x1d4   : > { %v1689_v24 = vpack.c.bf16 %v682_v21, %v679_v17  ;;  %v664_v25 = vpop.permute.xlu0 %663  ;;  %v681_v26 = vsel %vm670_vm3, %v645_v23, %v657_v18  ;;  %v680_v29 = vsel %vm670_vm3, %v644_v22, %v656_v20  ;;  %v666_v30 = vpop.permute.xlu1 %665  ;;  %v1707_v14 = vpack.c.bf16 %v907_v12, %v906_v11  ;;  %v917_v18 = vld [vmem:[%s2295_s4 + $0x118] sm:$0x3f]  ;;  %v908_v21 = vld [vmem:[%s2295_s4 + $0xd0] sm:$0xff] }
 0x1d5   : > { %v1681_v32 = vpack.c.bf16 %v681_v26, %v678_v19  ;;  %v1683_v33 = vpack.c.bf16 %v680_v29, %v677_v28  ;;  %v669_v34 = vsel %vm667_vm10, %v664_v25, %v666_v30  ;;  %v1727_v19 = vpack.c.bf16 %v917_v18, %v916_v16  ;;  %v909_v22 = vld [vmem:[%s2295_s4 + $0xd8] sm:$0xff]  ;;  %v910_v28 = vld [vmem:[%s2295_s4 + $0xe0] sm:$0xff]  ;;  %v911_v29 = vld [vmem:[%s2295_s4 + $0xe8] sm:$0xff] }
 0x1d6   : > { %1690 = vmatpush3.bf16.msra.mxu1 %v1689_v24  ;;  %v1711_v23 = vpack.c.bf16 %v909_v22, %v908_v21  ;;  %v892_v24 = vld [vmem:[%s2295_s4 + $0x50] sm:$0xff]  ;;  %v1095_v18 = vld [vmem:[%s2296_s5 + $0x8] sm:$0xff] }
 0x1d7   : > { %1682 = vmatprep.subr.bf16.mxu0 %v1681_v32  ;;  %1521 = vmatprep.subr.mxu1 %v1910_v31  ;;  %v1715_v32 = vpack.c.bf16 %v911_v29, %v910_v28  ;;  %v1219_v21 = vld [vmem:[%s2298_s7 + $0x8] sm:$0xff]  ;;  %v1220_v22 = vld [vmem:[%s2298_s7 + $0x10] sm:$0xff] }
 0x1d8   : > { %v662_v35 = vpop.permute.xlu0 %661  ;;  %1684 = vmatpush1.bf16.msra.mxu0 %v1683_v33  ;;  %v895_v33 = vld [vmem:[%s2295_s4 + $0x68] sm:$0xff] }
 0x1d9   : > { %1393 = vmatprep.subr.msk.mxu0 %vm670_vm3, %v669_v34  ;;  %v668_v37 = vsel %vm667_vm10, %v662_v35, %v664_v25  ;;  %v893_v25 = vld [vmem:[%s2295_s4 + $0x58] sm:$0xff]  ;;  %v1223_v28 = vld [vmem:[%s2298_s7 + $0x28] sm:$0xff] }
 0x1da   : > { %1522 = vmatpush3.msk.msra.mxu1 %vm670_vm3, %v666_v30  ;;  %v1713_v26 = vpack.c.bf16 %v893_v25, %v892_v24  ;;  %v894_v30 = vld [vmem:[%s2295_s4 + $0x60] sm:$0xff]  ;;  %v1221_v24 = vld [vmem:[%s2298_s7 + $0x18] sm:$0xff] }
 0x1db   : > { %1524 = vmatmul.mubr.msk.f32.vlgmr.msra.gmra.mrb[2].mxu1 %vm690_vm11, %v683_v36  ;;  %v1717_v34 = vpack.c.bf16 %v895_v33, %v894_v30  ;;  %v1750_v25 = vpack.c.bf16 %v1221_v24, %v1220_v22 }
 0x1dc   : > { %1394 = vmatpush1.msk.msra.mxu0 %vm670_vm3, %v668_v37  ;;  %v913_v37 = vld [vmem:[%s2295_s4 + $0xf8] sm:$0xff]  ;;  %vm1108_vm3 = vcmask 588800  }
 0x1dd   : > { %1395 = vmatmul.mubr.msk.f32.vlgmr.msra.gmra.mrb[2].mxu0 %vm690_vm11, %v683_v36  ;;  %1723 = vmatprep.subr.bf16.mxu0 %v1905_v27  ;;  %v912_v36 = vld [vmem:[%s2295_s4 + $0xf0] sm:$0xff] }
 0x1de   : > { %1534 = vmatprep.mubr.msk.f32.mxu0 %vm1909_vm1, %v1910_v31  ;;  %v899_v31 = vld [vmem:[%s2295_s4 + $0x88] sm:$0xff]  ;;  %1725 = vmatpush3.bf16.msra.mxu0 %v1724_v6  ;;  %vm918_vm1 = vcmask 244736   ;;  %v1096_v6 = vld [vmem:[%s2297_s6] sm:$0xff] }
 0x1df   : > { %v1691_v50 = vpack.c.bf16 %v899_v31, %v898_v47  ;;  %1726 = vmatprep.subr.bf16.mxu0 %v1905_v27  ;;  %v891_v27 = vld [vmem:[%s2295_s4 + $0x48] sm:$0xff] }
 0x1e0   : > { %v1709_v17 = vpack.c.bf16 %v891_v27, %v890_v15 }
 0x1e1   : > { %1692 = vmatprep.subr.bf16.mxu1 %v1691_v50 }
 0x1e2   : > { %1694 = vmatpush3.bf16.msra.mxu1 %v1693_v55  ;;  %1729 = vmatpush3.bf16.msk.msra.mxu0 %vm2174_vm14, %v1727_v19  ;;  %v1218_v19 = vld [vmem:[%s2298_s7] sm:$0xff] }
 0x1e3   : > { %1696 = vmatprep.subr.bf16.mxu1 %v1695_v56 }
 0x1e5   : > { %v688_v38 = vpop.permute.xlu1 %687 }
 0x1e6   : > { %1698 = vmatpush3.bf16.msra.mxu1 %v1697_v62 }
 0x1e7   : > { %1700 = vmatprep.subr.bf16.mxu1 %v1699_v0 }
 0x1ea   : > { %1702 = vmatpush3.bf16.msra.mxu1 %v1701_v7 }
 0x1eb   : > { %1704 = vmatprep.subr.bf16.mxu1 %v1703_v8 }
 0x1ee   : > { %1706 = vmatpush3.bf16.msra.mxu1 %v1705_v13 }
 0x1ef   : > { %1708 = vmatprep.subr.bf16.mxu1 %v1707_v14 }
 0x1f2   : > { %1710 = vmatpush3.bf16.msra.mxu1 %v1709_v17 }
 0x1f3   : > { %1712 = vmatprep.subr.bf16.mxu1 %v1711_v23  ;;  %v1746_v23 = vpack.c.bf16 %v1219_v21, %v1218_v19 }
 0x1f6   : > { %1714 = vmatpush3.bf16.msra.mxu1 %v1713_v26  ;;  %v1222_v26 = vld [vmem:[%s2298_s7 + $0x20] sm:$0xff] }
 0x1f7   : > { %1716 = vmatprep.subr.bf16.mxu1 %v1715_v32 }
 0x1fa   : > { %1718 = vmatpush3.bf16.msra.mxu1 %v1717_v34 }
 0x2ae   : > { %v837_v39 = vpop.f32.mrb[2].mxu1 }
 0x2af   : > { %v2084_v40 = vadd.f32 %v837_v39, %v688_v38  ;;  %v1525_v41 = vpop.f32.mrb[3].mxu1  ;;  %v1719_v39 = vpack.c.bf16 %v913_v37, %v912_v36  ;;  %v1224_v37 = vld [vmem:[%s2298_s7 + $0x30] sm:$0xff] }
 0x2b0   : > { %v766_v42 = vpop.f32.mrb[2].mxu0  ;;  %v896_v41 = vld [vmem:[%s2295_s4 + $0x70] sm:$0xff] }
 0x2b1   : > { %v843_v43 = vmax.f32 %v2084_v40, 0.0  ;;  %v2087_v44 = vadd.f32 %v766_v42, %v688_v38  ;;  %v768_v45 = vpop.f32.mrb[3].mxu0  ;;  %v897_v42 = vld [vmem:[%s2295_s4 + $0x78] sm:$0xff]  ;;  %1720 = vmatprep.subr.bf16.mxu1 %v1719_v39 }
 0x2b2   : > { %v2089_v46 = vadd.f32 %v768_v45, %v688_v38  ;;  %v1721_v47 = vpack.c.bf16 %v897_v42, %v896_v41 }
 0x2b3   : > { %v841_v49 = vmax.f32 %v2087_v44, 0.0  ;;  %851 = vrot.lane.b32.xlu1 %v843_v43, %s1902_s30 }
 0x2b4   : > { %v842_v54 = vmax.f32 %v2089_v46, 0.0  ;;  %1722 = vmatpush3.bf16.msra.mxu1 %v1721_v47  ;;  %v1227_v47 = vld [vmem:[%s2298_s7 + $0x48] sm:$0x3f] }
 0x2b5   : > { %1747 = vmatprep.subr.bf16.mxu1 %v1746_v23 }
 0x2b6   : > { %v1843_v61 = vpack.i.bf16 %v841_v49, %v842_v54 }
 0x2b8   : > { %1844 = vrot.lane.b32.xlu0 %v1843_v61, %s1902_s30 }
 0x325   : > { %v852_v35 = vpop.permute.xlu1 %851 }
 0x326   : > { %v859_v38 = vsel %vm858_vm15, %v852_v35, 0.0 }
 0x327   : > { %v862_v45 = vmax.f32 %v843_v43, %v859_v38  ;;  %v1225_v38 = vld [vmem:[%s2298_s7 + $0x38] sm:$0xff] }
 0x328   : > { %v1758_v42 = vpack.c.bf16 %v1225_v38, %v1224_v37 }
 0x329   : > { %870 = vrot.lane.b32.xlu1 %v862_v45, %s1901_s29 }
 0x32a   : > { %v1845_v31 = vpop.permute.xlu0 %1844 }
 0x32b   : > { %v1847_v48 = vunpack.i.h.bf16 %v1845_v31  ;;  %v1846_v50 = vunpack.i.l.bf16 %v1845_v31 }
 0x32d   : > { %v853_v51 = vsel %vm583_vm2, %v1847_v48, %v1846_v50  ;;  %v854_v52 = vsel %vm583_vm2, %v1846_v50, %v852_v35  ;;  %vm1066_vm2 = vcmask 818176   ;;  %v1754_v35 = vpack.c.bf16 %v1223_v28, %v1222_v26 }
 0x32e   : > { %v860_v53 = vmax.f32 %v841_v49, %v853_v51  ;;  %v861_v55 = vmax.f32 %v842_v54, %v854_v52 }
 0x330   : > { %v1848_v40 = vpack.i.bf16 %v860_v53, %v861_v55 }
 0x332   : > { %1849 = vrot.lane.b32.xlu0 %v1848_v40, %s1901_s29  ;;  %s1914_s29 = smov 117  }
 0x39b   : > { %v871_v43 = vpop.permute.xlu1 %870 }
 0x39c   : > { %v878_v56 = vsel %vm877_vm0, %v871_v43, 0.0 }
 0x39d   : > { %v881_v57 = vmax.f32 %v862_v45, %v878_v56  ;;  %v1226_v45 = vld [vmem:[%s2298_s7 + $0x40] sm:$0xff] }
 0x39e   : > { %v1762_v31 = vpack.c.bf16 %v1227_v47, %v1226_v45 }
 0x39f   : > { %1535 = vmatmul.mubr.msk.f32.vlgmr.msra.gmra.mrb[4].mxu0 %vm918_vm1, %v881_v57 }
 0x3a0   : > { %1555 = vmatprep.mubr.msk.f32.mxu0 %vm1108_vm3, %v1094_v4 }
 0x3a4   : > { %v1850_v58 = vpop.permute.xlu0 %1849 }
 0x3a5   : > { %v1852_v59 = vunpack.i.h.bf16 %v1850_v58  ;;  %v1851_v60 = vunpack.i.l.bf16 %v1850_v58 }
 0x3a7   : > { %v872_v61 = vsel %vm607_vm4, %v1852_v59, %v1851_v60  ;;  %v873_v44 = vsel %vm607_vm4, %v1851_v60, %v871_v43  ;;  %vm1200_vm4 = vcmask 629760  }
 0x3a8   : > { %v879_v49 = vmax.f32 %v860_v53, %v872_v61  ;;  %v880_v62 = vmax.f32 %v861_v55, %v873_v44 }
 0x3aa   : > { %990 = vmatprep.mubr.f32.mxu1 %v880_v62 }
 0x3ab   : > { %991 = vmatmul.mubr.f32.vlgmr.msra.gmra.mrb[4].mxu1 %v879_v49 }
 0x3ac   : > { %1749 = vmatpush3.bf16.msra.mxu1 %v1746_v23 }
 0x3ad   : > { %1751 = vmatprep.subr.bf16.mxu1 %v1750_v25 }
 0x3b0   : > { %1753 = vmatpush3.bf16.msra.mxu1 %v1750_v25 }
 0x3b1   : > { %1755 = vmatprep.subr.bf16.mxu1 %v1754_v35 }
 0x3b4   : > { %1757 = vmatpush3.bf16.msra.mxu1 %v1754_v35 }
 0x3b5   : > { %1759 = vmatprep.subr.bf16.mxu1 %v1758_v42 }
 0x3b8   : > { %1761 = vmatpush3.bf16.msra.mxu1 %v1758_v42 }
 0x3b9   : > { %1764 = vmatprep.subr.msk.bf16.mxu1 %vm2174_vm14, %v1762_v31 }
 0x3bc   : > { %1767 = vmatpush3.bf16.msk.msra.mxu1 %vm2174_vm14, %v1762_v31 }
 0x472   : > { %v1062_v46 = vpop.f32.mrb[4].mxu0 }
 0x473   : > { %v1536_v54 = vpop.f32.mrb[5].mxu0 }
 0x47e   : > { %v1482_v63 = vpop.f32.mrb[4].mxu1 }
 0x47f   : > { %v1483_v0 = vpop.f32.mrb[5].mxu1 }
 0x480   : > { %v1484_v1 = vadd.f32 %v1483_v0, %v1482_v63 }
 0x482   : > { %v1063_v2 = vadd.f32 %v1484_v1, %v1062_v46 }
 0x484   : > { %1067 = vst.msk [vmem:[#allocation3] sm:$0xff] %vm1066_vm2, %v1063_v2 }
 0x48b   : > { %v1068_v3 = vld [vmem:[#allocation3] sm:$0xff] }
 0x48c   : > { %1073 = vrot.lane.b32.xlu1 %v1068_v3, %s1904_s10  ;;  %1070 = vrot.lane.b32.xlu0 %v1068_v3, %s1902_s30  ;;  %s1918_s10 = smov 107  }
 0x490   : > { %1079 = vrot.lane.b32.xlu1 %v1068_v3, %s1914_s29  ;;  %1076 = vrot.lane.b32.xlu0 %v1068_v3, %s1915_s11 }
 0x494   : > { %1085 = vrot.lane.b32.xlu1 %v1068_v3, %s1903_s9  ;;  %1082 = vrot.lane.b32.xlu0 %v1068_v3, %s1916_s14 }
 0x498   : > { %1091 = vrot.lane.b32.xlu1 %v1068_v3, %s1917_s15  ;;  %1088 = vrot.lane.b32.xlu0 %v1068_v3, %s1918_s10 }
 0x49c   : > { %1105 = vperm.xlu1 %1842, %v1097_v5   ;;  %1100 = vperm.xlu0 %1853, %v1096_v6  }
 0x4fe   : > { %v1074_v7 = vpop.permute.xlu1 %1073  ;;  %v1071_v8 = vpop.permute.xlu0 %1070 }
 0x4ff   : > { %v1730_v9 = vpack.c.bf16 %v1071_v8, %v1068_v3 }
 0x501   : > { %1731 = vmatprep.subr.bf16.mxu0 %v1730_v9 }
 0x502   : > { %v1080_v10 = vpop.permute.xlu1 %1079  ;;  %1733 = vmatpush3.bf16.msra.mxu0 %v1730_v9  ;;  %v1077_v11 = vpop.permute.xlu0 %1076 }
 0x503   : > { %v1734_v12 = vpack.c.bf16 %v1077_v11, %v1074_v7 }
 0x505   : > { %1735 = vmatprep.subr.bf16.mxu0 %v1734_v12 }
 0x506   : > { %1737 = vmatpush3.bf16.msra.mxu0 %v1734_v12  ;;  %v1083_v13 = vpop.permute.xlu0 %1082  ;;  %v1086_v15 = vpop.permute.xlu1 %1085 }
 0x507   : > { %v1738_v14 = vpack.c.bf16 %v1083_v13, %v1080_v10 }
 0x509   : > { %1739 = vmatprep.subr.bf16.mxu0 %v1738_v14 }
 0x50a   : > { %1741 = vmatpush3.bf16.msra.mxu0 %v1738_v14  ;;  %v1089_v27 = vpop.permute.xlu0 %1088  ;;  %v1092_v17 = vpop.permute.xlu1 %1091 }
 0x50b   : > { %v1742_v16 = vpack.c.bf16 %v1089_v27, %v1086_v15 }
 0x50d   : > { %1743 = vmatprep.subr.bf16.mxu0 %v1742_v16 }
 0x50e   : > { %1745 = vmatpush3.bf16.msra.mxu0 %v1742_v16 }
 0x50f   : > { %1553 = vmatprep.subr.mxu0 %v1092_v17 }
 0x512   : > { %1554 = vmatpush3.msra.mxu0 %v1092_v17 }
 0x513   : > { %1556 = vmatmul.mubr.msk.f32.vlgmr.msra.gmra.mrb[6].mxu0 %vm1108_vm3, %v1095_v18 }
 0x51b   : > { %v1101_v29 = vpop.permute.xlu0 %1100  ;;  %v1106_v30 = vpop.permute.xlu1 %1105 }
 0x5e6   : > { %v1557_v32 = vpop.f32.mrb[6].mxu0 }
 0x5e7   : > { %v1187_v33 = vadd.f32 %v1557_v32, %v1106_v30  ;;  %v1181_v34 = vpop.f32.mrb[7].mxu0 }
 0x5e8   : > { %v1182_v36 = vadd.f32 %v1181_v34, %v1101_v29 }
 0x5e9   : > { %v1191_v39 = vmax.f32 %v1187_v33, 0.0 }
 0x5ea   : > { %v1190_v41 = vmax.f32 %v1182_v36, 0.0 }
 0x5eb   : > { %1196 = vrot.lane.b32.xlu0 %v1191_v39, %s1902_s30 }
 0x5ec   : > { %1194 = vrot.lane.b32.xlu1 %v1190_v41, %s1902_s30  ;;  %s1408_s30 = sshll.u32 %s2310_s28, 4 }
 0x5ed   : > { %s320_s25 = scalar_lea.vmem %s2299_s8, %s1408_s30 }
 0x65d   : > { %v1197_v48 = vpop.permute.xlu0 %1196 }
 0x65e   : > { %v1202_v50 = vsel %vm1200_vm4, %v1197_v48, 0.0  ;;  %v1195_v51 = vpop.permute.xlu1 %1194 }
 0x65f   : > { %v1204_v52 = vmax.f32 %v1191_v39, %v1202_v50  ;;  %v1201_v53 = vsel %vm1200_vm4, %v1195_v51, 0.0 }
 0x660   : > { %v1203_v55 = vmax.f32 %v1190_v41, %v1201_v53 }
 0x661   : > { %1209 = vrot.lane.b32.xlu0 %v1204_v52, %s1915_s11 }
 0x662   : > { %1207 = vrot.lane.b32.xlu1 %v1203_v55, %s1915_s11 }
 0x6d3   : > { %v1210_v40 = vpop.permute.xlu0 %1209 }
 0x6d4   : > { %v1215_v43 = vsel %vm1213_vm5, %v1210_v40, 0.0  ;;  %v1208_v56 = vpop.permute.xlu1 %1207 }
 0x6d5   : > { %v1214_v57 = vsel %vm1213_vm5, %v1208_v56, 0.0  ;;  %v1217_v58 = vmax.f32 %v1204_v52, %v1215_v43 }
 0x6d6   : > { %v1216_v20 = vmax.f32 %v1203_v55, %v1214_v57 }
 0x6d8   : > { %1578 = vmatprep.mubr.msk.f32.mxu1 %vm1228_vm6, %v1216_v20 }
 0x6d9   : > { %1579 = vmatmul.mubr.msk.f32.vlgmr.msra.gmra.mrb[6].mxu1 %vm1228_vm6, %v1217_v58 }
 0x7ac   : > { %v1580_v59 = vpop.f32.mrb[6].mxu1 }
 0x7ad   : > { %1314 = vst [vmem:[%s320_s25 + $0x8] sm:$0xff] %v1580_v59  ;;  %v1304_v60 = vpop.f32.mrb[7].mxu1 }
 0x7ae   : > { %1313 = vst [vmem:[%s320_s25] sm:$0xff] %v1304_v60 }
 0x7af PF: > { %s19_s27 = sadd.s32 1, %s1896_s27  }
 0x7b0   : > { %p16_p3 = scmp.ge.s32.totalorder %s19_s27, 4  }
 0x7b2   :  { %18 = sbr.rel (!%p16_p3) target bundleno = 1 (0x1), region = 87 }
 0x7b9   :  { %1336 = vsyncpa [#allocation5], 1 }
 0x7ba   :  { %1338 = vsyncpa [#allocation5 + $0x1], 1 }

</bundles_post_ra>
